<compile_context>
chip_gen: v7x
topology: tpu7x:2x2x1
jax: 0.10.0
libtpu: 0.0.40
codegen_flags: <defaults>
</compile_context>

<pallas_src>
import jax
import jax.numpy as jnp
from jax.experimental import pallas as pl
from jax.experimental.pallas import tpu as pltpu


def _mapper_kernel(x_ref, w_ref, b_ref, o_ref):
    # x_ref: (TM, K) bf16   w_ref: (K, TN) bf16   b_ref: (1, TN) f32   o_ref: (TM, TN) f32
    acc = jnp.dot(x_ref[...], w_ref[...], preferred_element_type=jnp.float32)
    o_ref[...] = jnp.tanh(acc + b_ref[...]).astype(o_ref.dtype)


def _pick_tn(N, max_tn=2048):
    """Largest lane-dense (multiple of 128) tile <= max_tn that divides N,
    preferring >=2 grid steps so the megacore can split the W stream."""
    best = None
    for cand in range(128, min(N, max_tn) + 1, 128):
        if N % cand == 0:
            if N // cand >= 2:
                best = cand
            elif best is None:
                best = cand
    if best is None:
        best = N  # fall back to a single full-width block (still legal: full dim)
    return best


def mlp_mapper(x, w, b, *, prefix_length, gpt2_dim, max_tn=2048,
               stream_dtype=jnp.bfloat16):
    """Pallas impl of MLPMapper.forward / TinyCLIPCap.forward.

    x: (B, clip_dim) float32
    w: (clip_dim, prefix_length * gpt2_dim) float32
    b: (prefix_length * gpt2_dim,) float32
    returns (B, prefix_length, gpt2_dim) float32
    """
    B, K = x.shape
    N = w.shape[1]
    assert N == prefix_length * gpt2_dim
    out_dtype = x.dtype

    # Batch tile: small batches get a single 8-row-aligned tile; large batches
    # are tiled at 128 rows. Pad B so tm divides the padded batch evenly.
    tm = 128 if B >= 128 else ((B + 7) // 8) * 8
    Bp = ((B + tm - 1) // tm) * tm
    if Bp != B:
        x = jnp.pad(x, ((0, Bp - B), (0, 0)))

    # Stream the big W matrix (and x) in bf16; accumulate in f32 on the MXU.
    x_c = x.astype(stream_dtype)
    w_c = w.astype(stream_dtype)
    b2 = b.reshape(1, N).astype(jnp.float32)

    tn = _pick_tn(N, max_tn=max_tn)
    n_m = Bp // tm
    n_n = N // tn

    itemsize = jnp.dtype(stream_dtype).itemsize
    # Double-buffered footprint: x tile + W tile + bias tile + out tile.
    vmem_bytes = 2 * (tm * K * itemsize + K * tn * itemsize + tn * 4 + tm * tn * 4)
    vmem_limit = int(min(32 * 1024 * 1024, max(2 * vmem_bytes, 16 * 1024 * 1024)))

    cost = pl.CostEstimate(
        flops=2 * Bp * K * N,
        transcendentals=Bp * N,
        bytes_accessed=(K * N * itemsize          # W streamed once
                        + n_n * Bp * K * itemsize  # x re-read per N tile
                        + N * 4                    # bias
                        + Bp * N * 4),             # output
    )

    out = pl.pallas_call(
        _mapper_kernel,
        out_shape=jax.ShapeDtypeStruct((Bp, N), out_dtype),
        grid_spec=pl.GridSpec(
            grid=(n_m, n_n),
            in_specs=[
                pl.BlockSpec((tm, K), lambda i, j: (i, 0)),   # x row tile
                pl.BlockSpec((K, tn), lambda i, j: (0, j)),   # wide W column tile
                pl.BlockSpec((1, tn), lambda i, j: (0, j)),   # bias tile
            ],
            out_specs=pl.BlockSpec((tm, tn), lambda i, j: (i, j)),
        ),
        compiler_params=pltpu.CompilerParams(
            dimension_semantics=("parallel", "parallel"),  # lets both TCs split work
            vmem_limit_bytes=vmem_limit,
        ),
        cost_estimate=cost,
    )(x_c, w_c, b2)

    return out[:B].reshape(B, prefix_length, gpt2_dim)


def reference(x, w, b, prefix_length, gpt2_dim):
    y = jnp.tanh(x @ w + b)
    return y.reshape(x.shape[0], prefix_length, gpt2_dim)


if __name__ == "__main__":
    # Small shapes consistent with the module: clip_dim hardcoded to 512 in
    # MLPMapper; gpt2_dim comes from the GPT-2 config (small: 128 here);
    # prefix_length=4 keeps the demo tiny.
    B = 2
    CLIP_DIM = 512
    GPT2_DIM = 128
    PREFIX_LEN = 4
    N = PREFIX_LEN * GPT2_DIM

    key = jax.random.PRNGKey(0)
    kx, kw, kb = jax.random.split(key, 3)

    # Deterministic synthetic "CLIP image embedding" and mapper parameters.
    x = jax.random.normal(kx, (B, CLIP_DIM), dtype=jnp.float32)
    w = jax.random.normal(kw, (CLIP_DIM, N), dtype=jnp.float32) * 0.02
    b = jax.random.normal(kb, (N,), dtype=jnp.float32) * 0.01

    out = mlp_mapper(x, w, b, prefix_length=PREFIX_LEN, gpt2_dim=GPT2_DIM)
    out = jax.block_until_ready(out)

    ref = reference(x, w, b, PREFIX_LEN, GPT2_DIM)
    assert out.shape == (B, PREFIX_LEN, GPT2_DIM)
    # Tolerance relaxed vs pure-f32 because W/x are streamed in bf16
    # (f32 MXU accumulation keeps the error well inside this bound).
    assert jnp.allclose(out, ref, atol=2e-2, rtol=2e-2)

    print("KERNEL_OK")
</pallas_src>

<mosaic_0001>
module attributes {stable_mosaic.version = 11 : i64} {
  func.func @_mapper_kernel(%arg0: i32, %arg1: i32, %arg2: memref<8x512xbf16, #tpu.memory_space<vmem>>, %arg3: memref<512x256xbf16, #tpu.memory_space<vmem>>, %arg4: memref<1x256xf32, #tpu.memory_space<vmem>>, %arg5: memref<8x256xf32, #tpu.memory_space<vmem>>) attributes {dimension_semantics = [#tpu.dimension_semantics<parallel>, #tpu.dimension_semantics<parallel>], iteration_bounds = array<i64: 1, 2>, scalar_prefetch = 0 : i64, scratch_operands = 0 : i64, tpu.core_type = #tpu.core_type<tc>, window_params = [{transform_indices = @transform_0, window_bounds = array<i64: 8, 512>}, {transform_indices = @transform_1, window_bounds = array<i64: 512, 256>}, {transform_indices = @transform_2, window_bounds = array<i64: 1, 256>}, {transform_indices = @transform_3, window_bounds = array<i64: 8, 256>}]} {
    %c0 = arith.constant 0 : index
    %c0_0 = arith.constant 0 : index
    %0 = vector.load %arg2[%c0, %c0_0] : memref<8x512xbf16, #tpu.memory_space<vmem>>, vector<8x512xbf16>
    %c0_1 = arith.constant 0 : index
    %c0_2 = arith.constant 0 : index
    %1 = vector.load %arg3[%c0_1, %c0_2] : memref<512x256xbf16, #tpu.memory_space<vmem>>, vector<512x256xbf16>
    %cst = arith.constant dense<0.000000e+00> : vector<8x256xf32>
    %2 = tpu.matmul %0, %1, %cst {dimension_numbers = #tpu.dot_dimension_numbers<[1], [0], [0], [1], [0, 0, 1, 1], [], []>} : vector<8x512xbf16>, vector<512x256xbf16>, vector<8x256xf32> -> vector<8x256xf32>
    %c0_3 = arith.constant 0 : index
    %c0_4 = arith.constant 0 : index
    %3 = vector.load %arg4[%c0_3, %c0_4] : memref<1x256xf32, #tpu.memory_space<vmem>>, vector<1x256xf32>
    %4 = vector.broadcast %3 : vector<1x256xf32> to vector<8x256xf32>
    %5 = arith.addf %2, %4 : vector<8x256xf32>
    %6 = math.tanh %5 : vector<8x256xf32>
    %c0_5 = arith.constant 0 : index
    %c0_6 = arith.constant 0 : index
    %7 = vector.load %arg5[%c0_5, %c0_6] : memref<8x256xf32, #tpu.memory_space<vmem>>, vector<8x256xf32>
    tpu.vector_store %arg5[%c0_5, %c0_6], %6 {strides = array<i32>} : memref<8x256xf32, #tpu.memory_space<vmem>>, vector<8x256xf32>,
    return
  }
  func.func @transform_0(%arg0: i32, %arg1: i32) -> (i32, i32) {
    %c0_i32 = arith.constant 0 : i32
    %c0_i32_0 = arith.constant 0 : i32
    return %arg0, %c0_i32 : i32, i32
  }
  func.func @transform_1(%arg0: i32, %arg1: i32) -> (i32, i32) {
    %c0_i32 = arith.constant 0 : i32
    %c0_i32_0 = arith.constant 0 : i32
    return %c0_i32, %arg1 : i32, i32
  }
  func.func @transform_2(%arg0: i32, %arg1: i32) -> (i32, i32) {
    %c0_i32 = arith.constant 0 : i32
    %c0_i32_0 = arith.constant 0 : i32
    return %c0_i32, %arg1 : i32, i32
  }
  func.func @transform_3(%arg0: i32, %arg1: i32) -> (i32, i32) {
    %c0_i32 = arith.constant 0 : i32
    return %arg0, %arg1 : i32, i32
  }
}

</mosaic_0001>

<bundles_post_ra>
// kernel: tpu_custom_call.1
= control target key start
LH: loop header
LB: loop body
LE: loop exit
PB: predicated region body
PF: predicated region fallthrough
CT: control target
= control target key end

     0   :  { %8 = vsyncpa [#allocation3], 0  ;;  %s1598_s0 = inlined_call_operand.hbm [shape: bf16[8,512], index: 0, kind: input, shape index: {}]   ;;  %s1599_s1 = inlined_call_operand.hbm [shape: bf16[512,512], index: 1, kind: input, shape index: {}]   ;;  %s1600_s2 = inlined_call_operand.vmem [shape: f32[1,512], index: 2, kind: input, shape index: {}]   ;;  %s1601_s3 = inlined_call_operand.hbm [shape: f32[8,512], index: 3, kind: output, shape index: {}]  }
   0x1   :  { %9 = vsyncpa [#allocation6], 0 }
   0x2   :  { %11 = vsyncpa [#allocation6 + $0x1], 0 }
   0x3   :  { %12 = vsyncpa [#allocation4], 0 }
   0x4   :  { %14 = vsyncpa [#allocation4 + $0x1], 0  ;;  %s1308_s12 = smov 0   ;;  %s1310_s13 = smov 0  }
   0x5   :  { %s1312_s14 = smov 0   ;;  %s1314_s15 = smov 0  }
   0x6   :  { %s1316_s16 = smov 0   ;;  %s1318_s17 = smov 0  }
   0x7 LB: > { %s864_s18 = sadd.s32 4294967295, %s1280_s17   ;;  %s865_s19 = sadd.s32 4294967294, %s1280_s17   ;;  %s1280_s17 = sphi %s1318_s17, %s20_s17   ;;  %s1276_s16 = sphi %s1316_s16, %s1629_s16   ;;  %s1272_s15 = sphi %s1314_s15, %s1628_s15   ;;  %s1268_s14 = sphi %s1312_s14, %s1627_s14   ;;  %s1264_s13 = sphi %s1310_s13, %s1626_s13   ;;  %s1260_s12 = sphi %s1308_s12, %s1625_s12  }
   0x8   : > { %s65_s20 = sadd.s32 1, %s1268_s14  ;;  %p72_p0 = scmp.ne.s32.totalorder %s1268_s14, %s1264_s13 }
   0x9   : > { %p73_p1 = scmp.eq.s32.totalorder %s1280_s17, 0  ;;  %p78_p2 = scmp.ne.s32.totalorder %s1264_s13, %s1260_s12 }
   0xa   : > { %p1346_p3 = scmp.eq.s32.totalorder %s864_s18, 0  ;;  %p130_p4 = scmp.eq.s32.totalorder %s864_s18, 1 }
   0xb   : > { %p1350_p5 = por %p73_p1, %p72_p0  ;;  %p136_p6 = scmp.eq.s32.totalorder %s865_s19, 1 }
   0xc   : > { %s1608_s21 = scalar_select %p1346_p3, 1, 0 }
   0xd   : > { %p1356_p7 = por %p1346_p3, %p78_p2  ;;  %p1360_p8 = por %p130_p4, %p72_p0 }
   0xe   : > { %p1364_p9 = por %p136_p6, %p78_p2  ;;  %p866_p10 = scmp.ge.s32.totalorder %s1280_s17, 1 }
   0xf   : > { %s1610_s23 = scalar_select %p1356_p7, 1, 0 }
  0x10   : > { %s1611_s24 = scalar_select %p1360_p8, 1, 0 }
  0x11   : > { %s1612_s25 = scalar_select %p1364_p9, 1, 0 }
  0x12   : > { %p143_p11 = scmp.lt.s32.totalorder %s1280_s17, 3  ;;  %s1282_s27 = smov [#allocation2]  }
  0x13   : > { %s159_s28 = sshll.u32 %s1282_s27, 4  ;;  %p977_p1 = scmp.lt.s32.totalorder %s1280_s17, 2  ;;  %s160_s28 = int_to_ptr.vmem [resolvable:$true] %s159_s28 }
  0x14   : > { %p1371_p13 = pnand %p866_p10, %p143_p11  ;;  %s29_s4 = sadd.s32 1, %s1276_s16 }
  0x15   : > { %p1380_p4 = pnand %p977_p1, %p1350_p5  ;;  %p1391_p6 = scmp.ge.s32.totalorder %s29_s4, 2 }
  0x16   : > { %s1613_s26 = scalar_select %p1371_p13, 1, 0 }
  0x17   : > { %p964_p0 = pneg %p1371_p13  ;;  %s170_s6 = sand.u32 1, %s1268_s14  }
  0x18   : > { %s1614_s29 = scalar_select %p1380_p4, 1, 0 }
  0x19   : > { %p1386_p2 = pnand %p964_p0, %p1346_p3  ;;  %s1136_s9 = scalar_lea.hbm %s1598_s0, 256 }
  0x1a   : > { %s1616_s5 = scalar_select %p1391_p6, 1, 0 }
  0x1b   : > { %p1137_p5 = scmp.ne.s32.totalorder %s1598_s0, %s1136_s9  ;;  %p1138_p10 = pneg %p1386_p2 }
  0x1c   : > { %p1143_p0 = scmp.lt.u32.totalorder %s1136_s9, %s1598_s0 }
  0x1d   : > { %p1139_p11 = pnand %p1138_p10, %p1137_p5 }
  0x1f   : > { %p1140_p1 = pneg %p1139_p11 }
  0x21   : > { %p1145_p12 = pnand %p1143_p0, %p1140_p1 }
  0x23   : > { %1148 = shalt.err (!%p1145_p12)
}
  0x24   : > { %s1149_s22 = scalar_lea.vmem %s160_s28, 256  ;;  %p1157_p3 = scmp.lt.s32.totalorder %s160_s28, %s160_s28 }
  0x25   : > { %p1150_p9 = scmp.ne.s32.totalorder %s160_s28, %s1149_s22  ;;  %p1158_p13 = scmp.lt.s32.totalorder %s1149_s22, %s1149_s22 }
  0x27   : > { %p1152_p8 = pnand %p1150_p9, %p1138_p10  ;;  %p1159_p4 = por %p1158_p13, %p1157_p3 }
  0x29   : > { %p1153_p7 = pneg %p1152_p8 }
  0x2b   : > { %p1160_p6 = pnand %p1159_p4, %p1153_p7 }
  0x2d   : > { %1163 = shalt.err (!%p1160_p6)
}
  0x2e   : > { %967 = dma.hbm_to_vmem [thread:$0]  (!%p1386_p2), %s1598_s0, 256, %s160_s28, [#allocation3]  }
  0x2f   : > { %p1617_p9 = scmp.ne.s32.totalorder %s1616_s5, 0  ;;  %s869_s8 = sshll.u32 %s170_s6, 9 }
  0x30   : > { %s950_s10 = sshll.u32 %s1276_s16, 7  ;;  %s174_s19 = scalar_lea.vmem [#allocation5], %s869_s8 }
  0x31   : > { %s1631_s4 = smov (%p1617_p9, %s29_s4), 0  ;;  %s1422_s18 = scalar_lea.hbm %s1599_s1, %s950_s10 }
  0x32   : > { %s62_s9 = ssub.s32 %s1276_s16, %s1631_s4  ;;  %s181_s22 = sshll.u32 %s174_s19, 4  ;;  %s1429_s22 = int_to_ptr.vmem [resolvable:$true] %s181_s22 }
  0x33   : > { %p63_p3 = scmp.eq.s32.totalorder %s62_s9, 0  ;;  %s1431_s5 = scalar_lea.sflag [#allocation6], %s170_s6 }
  0x34   : > { %s1164_s27 = scalar_lea.hbm %s1422_s18, 8192  ;;  %p1618_p8 = scmp.ne.s32.totalorder %s1614_s29, 0 }
  0x35   : > { %s1427_s28 = scalar_select %p63_p3, %s1268_s14, %s65_s20  }
  0x36   : > { %p1165_p7 = scmp.ne.s32.totalorder %s1422_s18, %s1164_s27  ;;  %p1166_p12 = pneg %p1618_p8 }
  0x37   : > { %s1169_s8 = scalar_lea.hbm %s1599_s1, 16384  ;;  %p1170_p2 = scmp.lt.u32.totalorder %s1422_s18, %s1599_s1 }
  0x38   : > { %p1167_p13 = pnand %p1166_p12, %p1165_p7  ;;  %p1171_p6 = scmp.lt.u32.totalorder %s1169_s8, %s1164_s27 }
  0x39   : > { %p1173_p10 = scmp.lt.u32.totalorder %s1164_s27, %s1422_s18 }
  0x3a   : > { %p1168_p4 = pneg %p1167_p13  ;;  %p1172_p5 = por %p1171_p6, %p1170_p2 }
  0x3c   : > { %p1174_p11 = por %p1173_p10, %p1172_p5 }
  0x3e   : > { %p1175_p1 = pnand %p1174_p11, %p1168_p4 }
  0x40   : > { %1178 = shalt.err (!%p1175_p1)
}
  0x41   : > { %s1179_s20 = scalar_lea.vmem %s1429_s22, 8192  ;;  %s1283_s6 = smov [#allocation5]  }
  0x42   : > { %p1180_p0 = scmp.ne.s32.totalorder %s1429_s22, %s1179_s20  ;;  %s1184_s11 = sshll.u32 %s1283_s6, 4  ;;  %s1185_s11 = int_to_ptr.vmem [resolvable:$false] %s1184_s11 }
  0x43   : > { %s1186_s19 = scalar_lea.vmem %s1185_s11, 16384  ;;  %p1187_p7 = scmp.lt.s32.totalorder %s1429_s22, %s1185_s11 }
  0x44   : > { %p1182_p9 = pnand %p1180_p0, %p1166_p12  ;;  %p1188_p13 = scmp.lt.s32.totalorder %s1186_s19, %s1179_s20 }
  0x46   : > { %p1183_p3 = pneg %p1182_p9  ;;  %p1189_p2 = por %p1188_p13, %p1187_p7 }
  0x48   : > { %p1190_p6 = pnand %p1189_p2, %p1183_p3 }
  0x4a   : > { %1193 = shalt.err (!%p1190_p6)
}
  0x4b   : > { %s1284_s27 = smov 256   ;;  %s1285_s7 = smov 128  }
  0x4c   : > { %s1286_s9 = smov 8   ;;  %p1619_p12 = scmp.ne.s32.totalorder %s1613_s26, 0 }
  0x4d   : > { %971 = dma.hbm_to_vmem [thread:$0]  (!%p1618_p8), %s1422_s18, 8192, %s1429_s22, %s1431_s5, %s1284_s27, %s1285_s7, %s1286_s9  }
  0x4e   : > { %201 = sbr.rel (%p1619_p12) target bundleno = 397 (0x18d), region = 32  ;;  %p1620_p4 = scmp.ne.s32.totalorder (!%p1619_p12), %s1608_s21, 0 }
  0x55   : > { %1247 = dma.done.wait (%p1620_p4), [#allocation3], 256  }
  0x56   : > { %1249 = vsyncadd (%p1620_p4), [#allocation3], 4294967040  ;;  %s1466_s8 = sand.u32 1, %s1264_s13   ;;  %p1621_p8 = scmp.ne.s32.totalorder %s1610_s23, 0 }
  0x57   : > { %s874_s10 = sshll.u32 %s1466_s8, 9  ;;  %s208_s30 = scalar_lea.sflag [#allocation6], %s1466_s8 }
  0x58   : > { %s1470_s20 = scalar_lea.vmem [#allocation5], %s874_s10 }
  0x59   : > { %1251 = dma.done.wait (%p1621_p8), %s208_s30, 8192  }
  0x5a   : > { %1253 = vsyncadd (%p1621_p8), %s208_s30, 4294959104  ;;  %v1032_v0 = vld [vmem:[%s1470_s20 + $0x4] ss:$8 sps:$4 sm:$0xff]   ;;  %v1036_v2 = vld [vmem:[%s1470_s20] ss:$8 sps:$4 sm:$0xff]   ;;  %s876_s21 = sshll.u32 %s1272_s15, 1 }
  0x5b   : > { %v1034_v1 = vld [vmem:[%s1470_s20 + $0x104] ss:$8 sps:$4 sm:$0xff]   ;;  %657 = vmatprep.subr.bf16.mxu1 %v1032_v0  ;;  %v1037_v3 = vld [vmem:[%s1470_s20 + $0x100] ss:$8 sps:$4 sm:$0xff]   ;;  %v1038_v4 = vld [vmem:[%s1470_s20 + $0x14] ss:$8 sps:$4 sm:$0xff]  }
  0x5c   : > { %698 = vmatprep.subr.bf16.mxu0 %v1034_v1  ;;  %658 = vmatpush1.bf16.msra.mxu1 %v1036_v2  ;;  %v1040_v5 = vld [vmem:[%s1470_s20 + $0x114] ss:$8 sps:$4 sm:$0xff]   ;;  %v1042_v6 = vld [vmem:[%s1470_s20 + $0x10] ss:$8 sps:$4 sm:$0xff]   ;;  %v1044_v8 = vld [vmem:[%s1470_s20 + $0x24] ss:$8 sps:$4 sm:$0xff]  }
  0x5d   : > { %699 = vmatpush1.bf16.msra.mxu0 %v1037_v3  ;;  %659 = vmatprep.subr.bf16.mxu1 %v1038_v4  ;;  %v1043_v7 = vld [vmem:[%s1470_s20 + $0x110] ss:$8 sps:$4 sm:$0xff]   ;;  %v1046_v9 = vld [vmem:[%s1470_s20 + $0x124] ss:$8 sps:$4 sm:$0xff]   ;;  %v1048_v10 = vld [vmem:[%s1470_s20 + $0x20] ss:$8 sps:$4 sm:$0xff]  }
  0x5e   : > { %700 = vmatprep.subr.bf16.mxu0 %v1040_v5  ;;  %v1049_v11 = vld [vmem:[%s1470_s20 + $0x120] ss:$8 sps:$4 sm:$0xff]   ;;  %v1050_v12 = vld [vmem:[%s1470_s20 + $0x34] ss:$8 sps:$4 sm:$0xff]   ;;  %v1054_v14 = vld [vmem:[%s1470_s20 + $0x30] ss:$8 sps:$4 sm:$0xff]  }
  0x5f   : > { %v1052_v13 = vld [vmem:[%s1470_s20 + $0x134] ss:$8 sps:$4 sm:$0xff]   ;;  %v1055_v15 = vld [vmem:[%s1470_s20 + $0x130] ss:$8 sps:$4 sm:$0xff]   ;;  %v1056_v16 = vld [vmem:[%s1470_s20 + $0x44] ss:$8 sps:$4 sm:$0xff]  }
  0x60   : > { %660 = vmatpush1.bf16.msra.mxu1 %v1042_v6  ;;  %v1058_v17 = vld [vmem:[%s1470_s20 + $0x144] ss:$8 sps:$4 sm:$0xff]   ;;  %v1060_v18 = vld [vmem:[%s1470_s20 + $0x40] ss:$8 sps:$4 sm:$0xff]   ;;  %v1062_v20 = vld [vmem:[%s1470_s20 + $0x54] ss:$8 sps:$4 sm:$0xff]   ;;  %v313_v6 = vlaneseq }
  0x61   : > { %701 = vmatpush1.bf16.msra.mxu0 %v1043_v7  ;;  %661 = vmatprep.subr.bf16.mxu1 %v1044_v8  ;;  %v1061_v19 = vld [vmem:[%s1470_s20 + $0x140] ss:$8 sps:$4 sm:$0xff]   ;;  %v1064_v21 = vld [vmem:[%s1470_s20 + $0x154] ss:$8 sps:$4 sm:$0xff]   ;;  %v1066_v22 = vld [vmem:[%s1470_s20 + $0x50] ss:$8 sps:$4 sm:$0xff]  }
  0x62   : > { %702 = vmatprep.subr.bf16.mxu0 %v1046_v9  ;;  %v1067_v23 = vld [vmem:[%s1470_s20 + $0x150] ss:$8 sps:$4 sm:$0xff]   ;;  %v1068_v24 = vld [vmem:[%s1470_s20 + $0x64] ss:$8 sps:$4 sm:$0xff]   ;;  %v1072_v26 = vld [vmem:[%s1470_s20 + $0x60] ss:$8 sps:$4 sm:$0xff]  }
  0x63   : > { %v1070_v25 = vld [vmem:[%s1470_s20 + $0x164] ss:$8 sps:$4 sm:$0xff]   ;;  %v1073_v27 = vld [vmem:[%s1470_s20 + $0x160] ss:$8 sps:$4 sm:$0xff]   ;;  %v1074_v28 = vld [vmem:[%s1470_s20 + $0x74] ss:$8 sps:$4 sm:$0xff]  }
  0x64   : > { %662 = vmatpush1.bf16.msra.mxu1 %v1048_v10  ;;  %v1076_v29 = vld [vmem:[%s1470_s20 + $0x174] ss:$8 sps:$4 sm:$0xff]   ;;  %v1078_v30 = vld [vmem:[%s1470_s20 + $0x70] ss:$8 sps:$4 sm:$0xff]   ;;  %v1080_v32 = vld [vmem:[%s1470_s20 + $0x84] ss:$8 sps:$4 sm:$0xff]  }
  0x65   : > { %703 = vmatpush1.bf16.msra.mxu0 %v1049_v11  ;;  %663 = vmatprep.subr.bf16.mxu1 %v1050_v12  ;;  %v1079_v31 = vld [vmem:[%s1470_s20 + $0x170] ss:$8 sps:$4 sm:$0xff]   ;;  %v1082_v33 = vld [vmem:[%s1470_s20 + $0x184] ss:$8 sps:$4 sm:$0xff]   ;;  %v1084_v34 = vld [vmem:[%s1470_s20 + $0x80] ss:$8 sps:$4 sm:$0xff]  }
  0x66   : > { %704 = vmatprep.subr.bf16.mxu0 %v1052_v13  ;;  %v1085_v35 = vld [vmem:[%s1470_s20 + $0x180] ss:$8 sps:$4 sm:$0xff]   ;;  %v1086_v36 = vld [vmem:[%s1470_s20 + $0x94] ss:$8 sps:$4 sm:$0xff]   ;;  %v1090_v38 = vld [vmem:[%s1470_s20 + $0x90] ss:$8 sps:$4 sm:$0xff]  }
  0x67   : > { %v1088_v37 = vld [vmem:[%s1470_s20 + $0x194] ss:$8 sps:$4 sm:$0xff]   ;;  %v1091_v39 = vld [vmem:[%s1470_s20 + $0x190] ss:$8 sps:$4 sm:$0xff]   ;;  %v1092_v40 = vld [vmem:[%s1470_s20 + $0xa4] ss:$8 sps:$4 sm:$0xff]  }
  0x68   : > { %664 = vmatpush1.bf16.msra.mxu1 %v1054_v14  ;;  %v1094_v41 = vld [vmem:[%s1470_s20 + $0x1a4] ss:$8 sps:$4 sm:$0xff]   ;;  %v1096_v42 = vld [vmem:[%s1470_s20 + $0xa0] ss:$8 sps:$4 sm:$0xff]   ;;  %v1098_v44 = vld [vmem:[%s1470_s20 + $0xb4] ss:$8 sps:$4 sm:$0xff]  }
  0x69   : > { %705 = vmatpush1.bf16.msra.mxu0 %v1055_v15  ;;  %665 = vmatprep.subr.bf16.mxu1 %v1056_v16  ;;  %v1097_v43 = vld [vmem:[%s1470_s20 + $0x1a0] ss:$8 sps:$4 sm:$0xff]   ;;  %v1100_v45 = vld [vmem:[%s1470_s20 + $0x1b4] ss:$8 sps:$4 sm:$0xff]   ;;  %v1102_v49 = vld [vmem:[%s1470_s20 + $0xb0] ss:$8 sps:$4 sm:$0xff]  }
  0x6a   : > { %706 = vmatprep.subr.bf16.mxu0 %v1058_v17  ;;  %v245_v46 = vld [vmem:[#allocation2] sm:$0xff]  ;;  %v246_v48 = vld [vmem:[#allocation2 + $0x8] sm:$0xff]  ;;  %v1104_v52 = vld [vmem:[%s1470_s20 + $0xc4] ss:$8 sps:$4 sm:$0xff]   ;;  %p240_p5 = scmp.lt.s32.totalorder %s876_s21, 3  ;;  %v314_v7 = vshrl.u32 %v313_v6, 7 }
  0x6b   : > { %v878_v47 = vcombine.high %v245_v46, %v245_v46  ;;  %v1103_v50 = vld [vmem:[%s1470_s20 + $0x1b0] ss:$8 sps:$4 sm:$0xff]   ;;  %v880_v51 = vcombine.high %v246_v48, %v246_v48  ;;  %v1106_v53 = vld [vmem:[%s1470_s20 + $0x1c4] ss:$8 sps:$4 sm:$0xff]   ;;  %v1108_v54 = vld [vmem:[%s1470_s20 + $0xc0] ss:$8 sps:$4 sm:$0xff]   ;;  %v877_v4 = vcombine.low %v245_v46, %v245_v46  ;;  %v879_v5 = vcombine.low %v246_v48, %v246_v48 }
  0x6c   : > { %666 = vmatpush1.bf16.msra.mxu1 %v1060_v18  ;;  %v1109_v55 = vld [vmem:[%s1470_s20 + $0x1c0] ss:$8 sps:$4 sm:$0xff]   ;;  %v1110_v56 = vld [vmem:[%s1470_s20 + $0xd4] ss:$8 sps:$4 sm:$0xff]   ;;  %v1114_v58 = vld [vmem:[%s1470_s20 + $0xd0] ss:$8 sps:$4 sm:$0xff]  }
  0x6d   : > { %707 = vmatpush1.bf16.msra.mxu0 %v1061_v19  ;;  %667 = vmatprep.subr.bf16.mxu1 %v1062_v20  ;;  %v1112_v57 = vld [vmem:[%s1470_s20 + $0x1d4] ss:$8 sps:$4 sm:$0xff]   ;;  %v1115_v59 = vld [vmem:[%s1470_s20 + $0x1d0] ss:$8 sps:$4 sm:$0xff]   ;;  %v1116_v60 = vld [vmem:[%s1470_s20 + $0xe4] ss:$8 sps:$4 sm:$0xff]  }
  0x6e   : > { %708 = vmatprep.subr.bf16.mxu0 %v1064_v21  ;;  %689 = vmatprep.mubr.bf16.mxu1 %v878_v47  ;;  %v1118_v61 = vld [vmem:[%s1470_s20 + $0x1e4] ss:$8 sps:$4 sm:$0xff]   ;;  %v1120_v62 = vld [vmem:[%s1470_s20 + $0xe0] ss:$8 sps:$4 sm:$0xff]   ;;  %v1122_v0 = vld [vmem:[%s1470_s20 + $0xf4] ss:$8 sps:$4 sm:$0xff]  }
  0x6f   : > { %730 = vmatprep.mubr.bf16.mxu0 %v880_v51  ;;  %v1121_v63 = vld [vmem:[%s1470_s20 + $0x1e0] ss:$8 sps:$4 sm:$0xff]   ;;  %v1124_v1 = vld [vmem:[%s1470_s20 + $0x1f4] ss:$8 sps:$4 sm:$0xff]   ;;  %v1126_v2 = vld [vmem:[%s1470_s20 + $0xf0] ss:$8 sps:$4 sm:$0xff]  }
  0x70   : > { %668 = vmatpush1.bf16.msra.mxu1 %v1066_v22  ;;  %v1127_v3 = vld [vmem:[%s1470_s20 + $0x1f0] ss:$8 sps:$4 sm:$0xff]   ;;  %s1633_s21 = smov (!%p240_p5, %s876_s21), 3  ;;  %v315_v8 = vsub.s32 0, %v314_v7  ;;  %v319_v10 = vsub.s32 1, %v314_v7  ;;  %s875_s18 = sshll.u32 %s1466_s8, 4 }
  0x71   : > { %709 = vmatpush1.bf16.msra.mxu0 %v1067_v23  ;;  %669 = vmatprep.subr.bf16.mxu1 %v1068_v24  ;;  %s242_s29 = scalar_lea.vmem %s1600_s2, %s1633_s21  ;;  %s951_s22 = sshll.u32 %s1272_s15, 8 }
  0x72   : > { %710 = vmatprep.subr.bf16.mxu0 %v1070_v25  ;;  %v311_v9 = vld [vmem:[%s242_s29] sm:$0x3]  ;;  %s237_s5 = scalar_lea.vmem [#allocation7], %s875_s18  ;;  %s1549_s27 = scalar_lea.hbm %s1601_s3, %s951_s22 }
  0x73   : > { %v316_v11 = vrot.slane %v311_v9, %v315_v8  ;;  %v320_v12 = vrot.slane %v311_v9, %v319_v10  ;;  %s760_s6 = sshll.u32 %s237_s5, 4  ;;  %s744_s7 = scalar_lea.sflag [#allocation4], %s1466_s8  ;;  %s1551_s6 = int_to_ptr.vmem [resolvable:$true] %s760_s6 }
  0x74   : > { %670 = vmatpush1.bf16.msra.mxu1 %v1072_v26  ;;  %s1194_s9 = scalar_lea.vmem %s1551_s6, 256  ;;  %p1622_p11 = scmp.ne.s32.totalorder %s1611_s24, 0 }
  0x75   : > { %711 = vmatpush1.bf16.msra.mxu0 %v1073_v27  ;;  %671 = vmatprep.subr.bf16.mxu1 %v1074_v28  ;;  %p1195_p10 = scmp.ne.s32.totalorder %s1551_s6, %s1194_s9  ;;  %s1287_s15 = smov [#allocation7]  }
  0x76   : > { %712 = vmatprep.subr.bf16.mxu0 %v1076_v29  ;;  %s1198_s10 = sshll.u32 %s1287_s15, 4  ;;  %s1199_s10 = int_to_ptr.vmem [resolvable:$false] %s1198_s10 }
  0x77   : > { %p1196_p1 = pnand %p1195_p10, %p1622_p11  ;;  %s1200_s30 = scalar_lea.vmem %s1199_s10, 512 }
  0x78   : > { %672 = vmatpush1.bf16.msra.mxu1 %v1078_v30  ;;  %p1201_p9 = scmp.lt.s32.totalorder %s1551_s6, %s1199_s10  ;;  %p1202_p3 = scmp.lt.s32.totalorder %s1200_s30, %s1194_s9 }
  0x79   : > { %713 = vmatpush1.bf16.msra.mxu0 %v1079_v31  ;;  %673 = vmatprep.subr.bf16.mxu1 %v1080_v32  ;;  %p1197_p0 = pneg %p1196_p1 }
  0x7a   : > { %714 = vmatprep.subr.bf16.mxu0 %v1082_v33  ;;  %p1203_p7 = por %p1202_p3, %p1201_p9 }
  0x7c   : > { %674 = vmatpush1.bf16.msra.mxu1 %v1084_v34  ;;  %p1204_p13 = pnand %p1203_p7, %p1197_p0 }
  0x7d   : > { %715 = vmatpush1.bf16.msra.mxu0 %v1085_v35  ;;  %675 = vmatprep.subr.bf16.mxu1 %v1086_v36 }
  0x7e   : > { %716 = vmatprep.subr.bf16.mxu0 %v1088_v37 }
  0x80   : > { %676 = vmatpush1.bf16.msra.mxu1 %v1090_v38 }
  0x81   : > { %717 = vmatpush1.bf16.msra.mxu0 %v1091_v39  ;;  %677 = vmatprep.subr.bf16.mxu1 %v1092_v40 }
  0x82   : > { %718 = vmatprep.subr.bf16.mxu0 %v1094_v41 }
  0x84   : > { %678 = vmatpush1.bf16.msra.mxu1 %v1096_v42 }
  0x85   : > { %719 = vmatpush1.bf16.msra.mxu0 %v1097_v43  ;;  %679 = vmatprep.subr.bf16.mxu1 %v1098_v44 }
  0x86   : > { %720 = vmatprep.subr.bf16.mxu0 %v1100_v45 }
  0x88   : > { %680 = vmatpush1.bf16.msra.mxu1 %v1102_v49 }
  0x89   : > { %721 = vmatpush1.bf16.msra.mxu0 %v1103_v50  ;;  %681 = vmatprep.subr.bf16.mxu1 %v1104_v52 }
  0x8a   : > { %722 = vmatprep.subr.bf16.mxu0 %v1106_v53 }
  0x8c   : > { %682 = vmatpush1.bf16.msra.mxu1 %v1108_v54 }
  0x8d   : > { %723 = vmatpush1.bf16.msra.mxu0 %v1109_v55  ;;  %683 = vmatprep.subr.bf16.mxu1 %v1110_v56 }
  0x8e   : > { %724 = vmatprep.subr.bf16.mxu0 %v1112_v57 }
  0x90   : > { %684 = vmatpush1.bf16.msra.mxu1 %v1114_v58 }
  0x91   : > { %725 = vmatpush1.bf16.msra.mxu0 %v1115_v59  ;;  %685 = vmatprep.subr.bf16.mxu1 %v1116_v60 }
  0x92   : > { %726 = vmatprep.subr.bf16.mxu0 %v1118_v61 }
  0x94   : > { %686 = vmatpush1.bf16.msra.mxu1 %v1120_v62 }
  0x95   : > { %727 = vmatpush1.bf16.msra.mxu0 %v1121_v63  ;;  %687 = vmatprep.subr.bf16.mxu1 %v1122_v0 }
  0x96   : > { %728 = vmatprep.subr.bf16.mxu0 %v1124_v1 }
  0x98   : > { %688 = vmatpush1.bf16.msra.mxu1 %v1126_v2 }
  0x99   : > { %729 = vmatpush1.bf16.msra.mxu0 %v1127_v3 }
  0x9b   : > { %690 = vmatmul.mubr.bf16.vlgmr.msra.gmra.mrb[0].mxu1 %v877_v4 }
  0x9c   : > { %731 = vmatmul.mubr.bf16.vlgmr.msra.gmra.mrb[0].mxu0 %v879_v5 }
 0x16e   : > { %v691_v13 = vpop.f32.mrb[0].mxu1 }
 0x16f   : > { %v732_v14 = vpop.f32.mrb[0].mxu0  ;;  %v692_v15 = vadd.f32 %v691_v13, %v316_v11  ;;  %v693_v16 = vpop.f32.mrb[1].mxu1 }
 0x170   : > { %v734_v17 = vpop.f32.mrb[1].mxu0  ;;  %v694_v18 = vadd.f32 %v693_v16, %v320_v12  ;;  %v695_v19 = vpop.f32.mrb[2].mxu1 }
 0x171   : > { %v736_v20 = vpop.f32.mrb[2].mxu0  ;;  %v733_v21 = vadd.f32 %v732_v14, %v692_v15  ;;  %v696_v22 = vpop.f32.mrb[3].mxu1 }
 0x172   : > { %v737_v23 = vpop.f32.mrb[3].mxu0  ;;  %v735_v24 = vadd.f32 %v734_v17, %v694_v18 }
 0x173   : > { %1132 = vtanh.f32 %v733_v21 }
 0x174   : > { %1134 = vtanh.f32 %v735_v24 }
 0x17d   : > { %v1133_v25 = vpop.eup %1132 }
 0x17e   : > { %v1135_v26 = vpop.eup %1134  ;;  %741 = vst [vmem:[%s237_s5] sm:$0xff] %v1133_v25 }
 0x17f   : > { %742 = vst [vmem:[%s237_s5 + $0x8] sm:$0xff] %v1135_v26 }
 0x180   : > { %1207 = shalt.err (!%p1204_p13)
}
 0x181   : > { %s1208_s8 = scalar_lea.hbm %s1549_s27, 256  ;;  %s1212_s23 = scalar_lea.hbm %s1601_s3, 512 }
 0x182   : > { %p1209_p2 = scmp.ne.s32.totalorder %s1549_s27, %s1208_s8  ;;  %p1213_p4 = scmp.lt.u32.totalorder %s1549_s27, %s1601_s3 }
 0x183   : > { %p1214_p8 = scmp.lt.u32.totalorder %s1212_s23, %s1208_s8  ;;  %p1216_p10 = scmp.lt.u32.totalorder %s1208_s8, %s1549_s27 }
 0x184   : > { %p1210_p6 = pnand %p1209_p2, %p1622_p11 }
 0x185   : > { %p1215_p5 = por %p1214_p8, %p1213_p4 }
 0x186   : > { %p1211_p12 = pneg %p1210_p6 }
 0x187   : > { %p1217_p1 = por %p1216_p10, %p1215_p5 }
 0x189   : > { %p1218_p0 = pnand %p1217_p1, %p1211_p12 }
 0x18b   : > { %1221 = shalt.err (!%p1218_p0)
}
 0x18c   : > { %962 = dma.vmem_to_hbm [thread:$0]  (%p1622_p11), %s1551_s6, 256, %s1549_s27, %s744_s7  }
 0x18d PF: > { %s772_s18 = sand.u32 1, %s1260_s12   ;;  %p1623_p9 = scmp.ne.s32.totalorder %s1612_s25, 0 }
 0x18e   : > { %p1624_p3 = scmp.ge.s32.totalorder %s1280_s17, 2  ;;  %s773_s22 = scalar_lea.sflag [#allocation4], %s772_s18 }
 0x190   : > { %p973_p7 = pnand %p1624_p3, %p1623_p9 }
 0x192   : > { %1255 = dma.done.wait (!%p973_p7), %s773_s22, 256  }
 0x193   : > { %1257 = vsyncadd (!%p973_p7), %s773_s22, 4294967040  ;;  %s20_s17 = sadd.s32 1, %s1280_s17   ;;  %s1625_s12 = smov %s1264_s13 }
 0x194   : > { %p17_p13 = scmp.ge.s32.totalorder %s20_s17, 4   ;;  %s1626_s13 = smov %s1268_s14 }
 0x195   : > { %s1627_s14 = smov %s1427_s28  ;;  %s1628_s15 = smov %s1276_s16 }
 0x196   : > { %s1629_s16 = smov %s1631_s4  ;;  %19 = sbr.rel (!%p17_p13) target bundleno = 7 (0x7), region = 86 }
 0x19d   :  { %778 = vsyncpa [#allocation3], 1 }
 0x19e   :  { %780 = vsyncpa [#allocation3 + $0x1], 1 }
 0x19f   :  { %781 = vsyncpa [#allocation6], 1 }
 0x1a0   :  { %783 = vsyncpa [#allocation6 + $0x1], 1 }
 0x1a1   :  { %784 = vsyncpa [#allocation4], 1 }
 0x1a2   :  { %786 = vsyncpa [#allocation4 + $0x1], 1 }

</bundles_post_ra>
